<compile_context>
chip_gen: v5e
topology: v5e:2x2
jax: 0.10.0
libtpu: 0.0.40
codegen_flags: <defaults>
</compile_context>

<pallas_src>
import jax
import jax.numpy as jnp
from jax.experimental import pallas as pl
from jax.experimental.pallas import tpu as pltpu

EPS = 1e-5


def _round_up(a, m):
    return (a + m - 1) // m * m


def conv_stats_kernel(w_ref, x_ref, sum_ref, sumsq_ref):
    """Pass 1: per-channel sum / sum-of-squares of the 1x1-conv output."""
    is_first = jnp.logical_and(pl.program_id(0) == 0, pl.program_id(1) == 0)

    @pl.when(is_first)
    def _():
        sum_ref[...] = jnp.zeros_like(sum_ref)
        sumsq_ref[...] = jnp.zeros_like(sumsq_ref)

    # (Cout, Cin) @ (Cin, hw_tile) -> (Cout, hw_tile); bf16 in, f32 accumulation.
    y = jnp.dot(w_ref[...], x_ref[0], preferred_element_type=jnp.float32)
    sum_ref[...] += jnp.sum(y, axis=1, keepdims=True)
    sumsq_ref[...] += jnp.sum(y * y, axis=1, keepdims=True)


def conv_apply_kernel(w_ref, x_ref, r_ref, scale_ref, shift_ref, o_ref):
    """Pass 2: recompute the tile matmul, apply folded BN scale/shift + residual."""
    y = jnp.dot(w_ref[...], x_ref[0], preferred_element_type=jnp.float32)
    o_ref[0] = r_ref[0] + y * scale_ref[...] + shift_ref[...]


def conv1x1_bn_add(x185, x179, weight, gamma, beta, eps=EPS):
    """x185, x179: (N, C, H, W) f32; weight: (Cout, Cin, 1, 1); gamma/beta: (Cout,)."""
    N, Cin, H, W = x185.shape
    Cout = weight.shape[0]
    HW = H * W

    # Padding: channels to a multiple of 8 (sublanes), HW to a multiple of 128 (lanes).
    Cin_p = _round_up(Cin, 8)
    Cout_p = _round_up(Cout, 8)
    HW_p = _round_up(HW, 128)
    if HW_p % 512 == 0:
        hw_tile = 512
    elif HW_p % 256 == 0:
        hw_tile = 256
    else:
        hw_tile = 128
    n_hw = HW_p // hw_tile

    x = x185.reshape(N, Cin, HW)          # free reshape (contiguous), no transpose
    r = x179.reshape(N, Cout, HW)
    w = weight.reshape(Cout, Cin)
    g = gamma
    b = beta

    if Cin_p != Cin:
        x = jnp.pad(x, ((0, 0), (0, Cin_p - Cin), (0, 0)))
        w = jnp.pad(w, ((0, 0), (0, Cin_p - Cin)))
    if Cout_p != Cout:
        w = jnp.pad(w, ((0, Cout_p - Cout), (0, 0)))
        r = jnp.pad(r, ((0, 0), (0, Cout_p - Cout), (0, 0)))
        g = jnp.pad(g, (0, Cout_p - Cout))
        b = jnp.pad(b, (0, Cout_p - Cout))
    if HW_p != HW:
        x = jnp.pad(x, ((0, 0), (0, 0), (0, HW_p - HW)))
        r = jnp.pad(r, ((0, 0), (0, 0), (0, HW_p - HW)))

    # bf16 MXU path (f32 accumulation inside the kernels); residual/output stay f32.
    x_bf = x.astype(jnp.bfloat16)
    w_bf = w.astype(jnp.bfloat16)
    r = r.astype(jnp.float32)

    grid = (N, n_hw)
    w_spec = pl.BlockSpec((Cout_p, Cin_p), lambda n, t: (0, 0))        # resident weight
    x_spec = pl.BlockSpec((1, Cin_p, hw_tile), lambda n, t: (n, 0, t))
    r_spec = pl.BlockSpec((1, Cout_p, hw_tile), lambda n, t: (n, 0, t))
    o_spec = pl.BlockSpec((1, Cout_p, hw_tile), lambda n, t: (n, 0, t))
    vec_spec = pl.BlockSpec((Cout_p, 1), lambda n, t: (0, 0))          # resident vectors

    # ---- pass 1: batch statistics (accumulated across the whole grid)
    sum_c, sumsq_c = pl.pallas_call(
        conv_stats_kernel,
        out_shape=(jax.ShapeDtypeStruct((Cout_p, 1), jnp.float32),
                   jax.ShapeDtypeStruct((Cout_p, 1), jnp.float32)),
        grid=grid,
        in_specs=[w_spec, x_spec],
        out_specs=(vec_spec, vec_spec),
        compiler_params=pltpu.CompilerParams(
            dimension_semantics=("arbitrary", "arbitrary")),
    )(w_bf, x_bf)

    # ---- fold BN into per-channel scale/shift (tiny f32 op on (Cout,1) vectors)
    cnt = jnp.float32(N * HW)      # zero-padded positions contribute exactly 0 to the sums
    mean = sum_c / cnt
    var = jnp.maximum(sumsq_c / cnt - mean * mean, 0.0)
    inv_std = jax.lax.rsqrt(var + eps)
    scale = g.reshape(Cout_p, 1).astype(jnp.float32) * inv_std
    shift = b.reshape(Cout_p, 1).astype(jnp.float32) - mean * scale

    # ---- pass 2: o = r + y * scale + shift (tile matmul recomputed, mem-bound body)
    out_p = pl.pallas_call(
        conv_apply_kernel,
        out_shape=jax.ShapeDtypeStruct((N, Cout_p, HW_p), jnp.float32),
        grid=grid,
        in_specs=[w_spec, x_spec, r_spec, vec_spec, vec_spec],
        out_specs=o_spec,
        compiler_params=pltpu.CompilerParams(
            dimension_semantics=("parallel", "parallel")),
    )(w_bf, x_bf, r, scale, shift)

    return out_p[:, :Cout, :HW].reshape(N, Cout, H, W)


if __name__ == "__main__":
    # Small shapes consistent with the module (1x1 conv, Cin == Cout, NCHW).
    N, C, Hs, Ws = 2, 32, 8, 8

    key = jax.random.PRNGKey(0)
    k1, k2, k3, k4, k5 = jax.random.split(key, 5)

    x185 = jax.random.normal(k1, (N, C, Hs, Ws), dtype=jnp.float32)
    x179 = jax.random.normal(k2, (N, C, Hs, Ws), dtype=jnp.float32)
    # Conv2d(C, C, kernel_size=1, bias=False) weight
    weight = jax.random.normal(k3, (C, C, 1, 1), dtype=jnp.float32) * 0.05
    # BatchNorm2d affine params
    gamma = 1.0 + 0.1 * jax.random.normal(k4, (C,), dtype=jnp.float32)
    beta = 0.1 * jax.random.normal(k5, (C,), dtype=jnp.float32)

    out = conv1x1_bn_add(x185, x179, weight, gamma, beta)
    jax.block_until_ready(out)

    # Pure-JAX reference (matmul inputs rounded to bf16 like the kernel, f32 math).
    xb = x185.astype(jnp.bfloat16).astype(jnp.float32)
    wb = weight.reshape(C, C).astype(jnp.bfloat16).astype(jnp.float32)
    y = jnp.einsum("oc,nchw->nohw", wb, xb, precision=jax.lax.Precision.HIGHEST)
    mean = y.mean(axis=(0, 2, 3), keepdims=True)
    var = y.var(axis=(0, 2, 3), keepdims=True)          # biased, like BN train mode
    y_norm = (y - mean) * jax.lax.rsqrt(var + EPS)
    ref = x179 + y_norm * gamma.reshape(1, C, 1, 1) + beta.reshape(1, C, 1, 1)

    max_err = float(jnp.max(jnp.abs(out - ref)))
    assert jnp.allclose(out, ref, atol=2e-3, rtol=2e-3), (
        "mismatch vs reference: max abs err = %e" % max_err)

    print("KERNEL_OK")
</pallas_src>

<mosaic_0001>
module attributes {stable_mosaic.version = 11 : i64} {
  func.func @conv_stats_kernel(%arg0: i32, %arg1: i32, %arg2: memref<32x32xbf16, #tpu.memory_space<vmem>>, %arg3: memref<1x32x128xbf16, #tpu.memory_space<vmem>>, %arg4: memref<32x1xf32, #tpu.memory_space<vmem>>, %arg5: memref<32x1xf32, #tpu.memory_space<vmem>>) attributes {dimension_semantics = [#tpu.dimension_semantics<arbitrary>, #tpu.dimension_semantics<arbitrary>], iteration_bounds = array<i64: 2, 1>, scalar_prefetch = 0 : i64, scratch_operands = 0 : i64, tpu.core_type = #tpu.core_type<tc>, window_params = [{pipeline_mode = #tpu.pipeline_mode<synchronous>, transform_indices = @transform_0, window_bounds = array<i64: 32, 32>}, {transform_indices = @transform_1, window_bounds = array<i64: 1, 32, 128>}, {pipeline_mode = #tpu.pipeline_mode<synchronous>, transform_indices = @transform_2, window_bounds = array<i64: 32, 1>}, {pipeline_mode = #tpu.pipeline_mode<synchronous>, transform_indices = @transform_3, window_bounds = array<i64: 32, 1>}]} {
    %c0_i32 = arith.constant 0 : i32
    %0 = arith.cmpi eq, %arg0, %c0_i32 : i32
    %c0_i32_0 = arith.constant 0 : i32
    %1 = arith.cmpi eq, %arg1, %c0_i32_0 : i32
    %2 = arith.andi %0, %1 : i1
    %3 = arith.extui %2 : i1 to i32
    %c0_i32_1 = arith.constant 0 : i32
    %4 = arith.cmpi ne, %3, %c0_i32_1 : i32
    scf.if %4 {
      %cst_16 = arith.constant 0.000000e+00 : f32
      %20 = vector.broadcast %cst_16 : f32 to vector<32x1xf32>
      %c0_17 = arith.constant 0 : index
      %c0_18 = arith.constant 0 : index
      %21 = vector.load %arg4[%c0_17, %c0_18] : memref<32x1xf32, #tpu.memory_space<vmem>>, vector<32x1xf32>
      tpu.vector_store %arg4[%c0_17, %c0_18], %20 {strides = array<i32>} : memref<32x1xf32, #tpu.memory_space<vmem>>, vector<32x1xf32>,
      %cst_19 = arith.constant 0.000000e+00 : f32
      %22 = vector.broadcast %cst_19 : f32 to vector<32x1xf32>
      %c0_20 = arith.constant 0 : index
      %c0_21 = arith.constant 0 : index
      %23 = vector.load %arg5[%c0_20, %c0_21] : memref<32x1xf32, #tpu.memory_space<vmem>>, vector<32x1xf32>
      tpu.vector_store %arg5[%c0_20, %c0_21], %22 {strides = array<i32>} : memref<32x1xf32, #tpu.memory_space<vmem>>, vector<32x1xf32>,
    } else {
    }
    %c0 = arith.constant 0 : index
    %c0_2 = arith.constant 0 : index
    %5 = vector.load %arg2[%c0, %c0_2] : memref<32x32xbf16, #tpu.memory_space<vmem>>, vector<32x32xbf16>
    %c0_3 = arith.constant 0 : index
    %c0_4 = arith.constant 0 : index
    %c0_5 = arith.constant 0 : index
    %6 = vector.load %arg3[%c0_3, %c0_4, %c0_5] : memref<1x32x128xbf16, #tpu.memory_space<vmem>>, vector<1x32x128xbf16>
    %7 = vector.shape_cast %6 : vector<1x32x128xbf16> to vector<32x128xbf16>
    %cst = arith.constant dense<0.000000e+00> : vector<32x128xf32>
    %8 = tpu.matmul %5, %7, %cst {dimension_numbers = #tpu.dot_dimension_numbers<[1], [0], [0], [1], [0, 0, 1, 1], [], []>} : vector<32x32xbf16>, vector<32x128xbf16>, vector<32x128xf32> -> vector<32x128xf32>
    %c0_6 = arith.constant 0 : index
    %c0_7 = arith.constant 0 : index
    %9 = vector.load %arg4[%c0_6, %c0_7] : memref<32x1xf32, #tpu.memory_space<vmem>>, vector<32x1xf32>
    %cst_8 = arith.constant dense<0.000000e+00> : vector<32xf32>
    %10 = vector.multi_reduction <add>, %8, %cst_8 [1] : vector<32x128xf32> to vector<32xf32>
    %11 = vector.shape_cast %10 : vector<32xf32> to vector<32x1xf32>
    %12 = arith.addf %9, %11 : vector<32x1xf32>
    %c0_9 = arith.constant 0 : index
    %c0_10 = arith.constant 0 : index
    %13 = vector.load %arg4[%c0_9, %c0_10] : memref<32x1xf32, #tpu.memory_space<vmem>>, vector<32x1xf32>
    tpu.vector_store %arg4[%c0_9, %c0_10], %12 {strides = array<i32>} : memref<32x1xf32, #tpu.memory_space<vmem>>, vector<32x1xf32>,
    %c0_11 = arith.constant 0 : index
    %c0_12 = arith.constant 0 : index
    %14 = vector.load %arg5[%c0_11, %c0_12] : memref<32x1xf32, #tpu.memory_space<vmem>>, vector<32x1xf32>
    %15 = arith.mulf %8, %8 : vector<32x128xf32>
    %cst_13 = arith.constant dense<0.000000e+00> : vector<32xf32>
    %16 = vector.multi_reduction <add>, %15, %cst_13 [1] : vector<32x128xf32> to vector<32xf32>
    %17 = vector.shape_cast %16 : vector<32xf32> to vector<32x1xf32>
    %18 = arith.addf %14, %17 : vector<32x1xf32>
    %c0_14 = arith.constant 0 : index
    %c0_15 = arith.constant 0 : index
    %19 = vector.load %arg5[%c0_14, %c0_15] : memref<32x1xf32, #tpu.memory_space<vmem>>, vector<32x1xf32>
    tpu.vector_store %arg5[%c0_14, %c0_15], %18 {strides = array<i32>} : memref<32x1xf32, #tpu.memory_space<vmem>>, vector<32x1xf32>,
    return
  }
  func.func @transform_0(%arg0: i32, %arg1: i32) -> (i32, i32) {
    %c0_i32 = arith.constant 0 : i32
    %c0_i32_0 = arith.constant 0 : i32
    %c0_i32_1 = arith.constant 0 : i32
    return %c0_i32, %c0_i32_0 : i32, i32
  }
  func.func @transform_1(%arg0: i32, %arg1: i32) -> (i32, i32, i32) {
    %c0_i32 = arith.constant 0 : i32
    %c0_i32_0 = arith.constant 0 : i32
    return %arg0, %c0_i32, %arg1 : i32, i32, i32
  }
  func.func @transform_2(%arg0: i32, %arg1: i32) -> (i32, i32) {
    %c0_i32 = arith.constant 0 : i32
    %c0_i32_0 = arith.constant 0 : i32
    %c0_i32_1 = arith.constant 0 : i32
    return %c0_i32, %c0_i32_0 : i32, i32
  }
  func.func @transform_3(%arg0: i32, %arg1: i32) -> (i32, i32) {
    %c0_i32 = arith.constant 0 : i32
    %c0_i32_0 = arith.constant 0 : i32
    %c0_i32_1 = arith.constant 0 : i32
    return %c0_i32, %c0_i32_0 : i32, i32
  }
}

</mosaic_0001>

<bundles_post_ra>
// kernel: tpu_custom_call.1
= control target key start
LH: loop header
LB: loop body
LE: loop exit
PB: predicated region body
PF: predicated region fallthrough
CT: control target
= control target key end

     0   :  { %9 = vsyncpa [#allocation3], 0  ;;  %s828_s0 = inlined_call_operand.hbm [shape: bf16[32,32], index: 0, kind: input, shape index: {}]   ;;  %s829_s1 = inlined_call_operand.hbm [shape: bf16[2,32,128], index: 1, kind: input, shape index: {}]   ;;  %s830_s2 = inlined_call_operand.vmem [shape: f32[32,1], index: 2, kind: output, shape index: {0}]   ;;  %s831_s3 = inlined_call_operand.vmem [shape: f32[32,1], index: 3, kind: output, shape index: {1}]  }
   0x1   :  { %10 = vsyncpa [#allocation5], 0 }
   0x2   :  { %12 = vsyncpa [#allocation5 + $0x1], 0  ;;  %s641_s12 = smov 0   ;;  %s643_s13 = smov 0  }
   0x3   :  { %s645_s14 = smov 0   ;;  %s647_s15 = smov 0  }
   0x4   :  { %s649_s16 = smov 0   ;;  %s651_s17 = smov 0  }
   0x5 LB: > { %s393_s18 = sadd.s32 4294967295, %s615_s17   ;;  %p73_p0 = scmp.ne.s32.totalorder %s599_s13, %s595_s12  ;;  %s615_s17 = sphi %s651_s17, %s18_s17   ;;  %s611_s16 = sphi %s649_s16, %s840_s16   ;;  %s607_s15 = sphi %s647_s15, %s839_s15   ;;  %s603_s14 = sphi %s645_s14, %s838_s14   ;;  %s599_s13 = sphi %s643_s13, %s837_s13   ;;  %s595_s12 = sphi %s641_s12, %s836_s12  }
   0x6   : > { %p671_p1 = scmp.eq.s32.totalorder %s393_s18, 0  ;;  %p394_p2 = scmp.ge.s32.totalorder %s615_s17, 1 }
   0x7   : > { %p126_p3 = scmp.lt.s32.totalorder %s615_s17, 3  ;;  %s137_s23 = sshll.u32 %s828_s0, 4  ;;  %s138_s23 = int_to_ptr.hbm [resolvable:$true] %s137_s23 }
   0x8   : > { %p679_p4 = por %p671_p1, %p73_p0  ;;  %s617_s25 = smov [#allocation2]  }
   0x9   : > { %p686_p5 = pnand %p394_p2, %p126_p3  ;;  %s139_s26 = sshll.u32 %s617_s25, 4  ;;  %s140_s26 = int_to_ptr.vmem [resolvable:$true] %s139_s26 }
   0xa   : > { %s618_s27 = smov 64   ;;  %s619_s28 = smov 4  }
   0xb   : > { %p438_p6 = pneg %p686_p5  ;;  %s30_s29 = sadd.s32 1, %s611_s16 }
   0xc   : > { %p32_p8 = scmp.ge.s32.totalorder %s30_s29, 2  ;;  %p67_p9 = scmp.ne.s32.totalorder %s603_s14, %s599_s13 }
   0xd   : > { %p439_p7 = pnand %p438_p6, %p671_p1  ;;  %p68_p10 = scmp.eq.s32.totalorder %s615_s17, 0 }
   0xe   : > { %s842_s29 = smov (%p32_p8, %s30_s29), 0  ;;  %s60_s30 = sadd.s32 1, %s603_s14 }
   0xf   : > { %441 = dma.hbm_to_vmem [thread:$0]  (!%p439_p7), %s138_s23, 256, %s140_s26, [#allocation3], %s618_s27, %s618_s27, %s619_s28  }
  0x10   : > { %p701_p11 = por %p68_p10, %p67_p9  ;;  %s55_s5 = ssub.s32 %s611_s16, %s842_s29 }
  0x11   : > { %s153_s6 = sand.u32 1, %s603_s14   ;;  %p58_p12 = scmp.eq.s32.totalorder %s55_s5, 0 }
  0x12   : > { %p447_p13 = scmp.lt.s32.totalorder %s615_s17, 2  ;;  %s397_s7 = sshll.u32 %s153_s6, 4 }
  0x13   : > { %s424_s8 = sshll.u32 %s611_s16, 4  ;;  %s157_s21 = scalar_lea.vmem [#allocation4], %s397_s7 }
  0x14   : > { %s711_s9 = scalar_select %p58_p12, %s603_s14, %s60_s30  }
  0x15   : > { %s163_s12 = scalar_lea.hbm %s829_s1, %s424_s8  ;;  %s166_s22 = sshll.u32 %s157_s21, 4  ;;  %s167_s22 = int_to_ptr.vmem [resolvable:$true] %s166_s22 }
  0x16   : > { %s164_s18 = sshll.u32 %s163_s12, 4  ;;  %p443_p0 = pnand %p447_p13, %p701_p11  ;;  %s165_s18 = int_to_ptr.hbm [resolvable:$true] %s164_s18 }
  0x17   : > { %s154_s23 = scalar_lea.sflag [#allocation5], %s153_s6  ;;  %178 = sbr.rel (%p686_p5) target bundleno = 313 (0x139), region = 28 }
  0x18   : > { %445 = dma.hbm_to_vmem [thread:$0]  (!%p443_p0), %s165_s18, 256, %s167_s22, %s154_s23, %s618_s27, %s618_s27, %s619_s28  }
  0x1c   : > { %586 = dma.done.wait (%p671_p1), [#allocation3], 256  }
  0x1d   : > { %588 = vsyncadd (%p671_p1), [#allocation3], 4294967040  ;;  %s185_s25 = sand.u32 1, %s599_s13  }
  0x1e   : > { %s402_s26 = sshll.u32 %s185_s25, 4  ;;  %s186_s30 = scalar_lea.sflag [#allocation5], %s185_s25 }
  0x1f   : > { %s189_s5 = scalar_lea.vmem [#allocation4], %s402_s26 }
  0x20   : > { %590 = dma.done.wait (%p679_p4), %s186_s30, 256  }
  0x21   : > { %592 = vsyncadd (%p679_p4), %s186_s30, 4294967040  ;;  %p209_p2 = scmp.eq.s32.totalorder %s607_s15, 0 }
  0x22   : > { %vm215_vm0 = vcmask (%p209_p2), 7168   ;;  %v620_v0 = vmov (%p209_p2), 0.0  }
  0x23   : > { %214 = sbr.rel (!%p209_p2) target bundleno = 43 (0x2b), region = 40  ;;  %216 = vst.msk [vmem:[%s830_s2] sm:$0xff] (%p209_p2), %vm215_vm0, %v620_v0 }
  0x24   : > { %217 = vst.msk [vmem:[%s830_s2 + $0x8] sm:$0xff] (%p209_p2), %vm215_vm0, %v620_v0 }
  0x25   : > { %218 = vst.msk [vmem:[%s830_s2 + $0x10] sm:$0xff] (%p209_p2), %vm215_vm0, %v620_v0 }
  0x26   : > { %219 = vst.msk [vmem:[%s830_s2 + $0x18] sm:$0xff] (%p209_p2), %vm215_vm0, %v620_v0 }
  0x27   : > { %220 = vst.msk [vmem:[%s831_s3] sm:$0xff] (%p209_p2), %vm215_vm0, %v620_v0 }
  0x28   : > { %221 = vst.msk [vmem:[%s831_s3 + $0x8] sm:$0xff] %vm215_vm0, %v620_v0 }
  0x29   : > { %222 = vst.msk [vmem:[%s831_s3 + $0x10] sm:$0xff] %vm215_vm0, %v620_v0 }
  0x2a   : > { %223 = vst.msk [vmem:[%s831_s3 + $0x18] sm:$0xff] %vm215_vm0, %v620_v0 }
  0x2b PF: > { %v429_v1 = vld [vmem:[%s189_s5 + $0x8] sm:$0xff]  ;;  %v428_v2 = vld [vmem:[%s189_s5] sm:$0xff]  ;;  %vm254_vm1 = vcmask 261120   ;;  %vm296_vm2 = vcmask 7168  }
  0x2c   : > { %267 = vmatpush.bf16.msra.mxu0 %v429_v1  ;;  %430 = vmatpush.bf16.msra.mxu1 %v429_v1  ;;  %v426_v3 = vld [vmem:[#allocation2] sm:$0xff]  ;;  %v427_v4 = vld [vmem:[#allocation2 + $0x8] sm:$0xff] }
  0x2d   : > { %v280_v14 = vld [vmem:[%s830_s2] sm:$0xff] }
  0x2e   : > { %v281_v23 = vld [vmem:[%s830_s2 + $0x8] sm:$0xff] }
  0x2f   : > { %v282_v13 = vld [vmem:[%s830_s2 + $0x10] sm:$0xff] }
  0x30   : > { %268 = vmatpush.bf16.msra.mxu0 %v428_v2  ;;  %431 = vmatpush.bf16.msra.mxu1 %v428_v2  ;;  %v283_v22 = vld [vmem:[%s830_s2 + $0x18] sm:$0xff]  ;;  %v303_v32 = vld [vmem:[%s831_s3 + $0x10] sm:$0xff] }
  0x31   : > { %v301_v17 = vld [vmem:[%s831_s3] sm:$0xff]  ;;  %v304_v31 = vld [vmem:[%s831_s3 + $0x18] sm:$0xff] }
  0x32   : > { %v302_v26 = vld [vmem:[%s831_s3 + $0x8] sm:$0xff] }
  0x33   : > { %420 = vmatmul.msk.bf16.vlgmr.msra.gmra.mxu0 %vm254_vm1, %v426_v3  ;;  %421 = vmatmul.msk.bf16.vlgmr.msra.gmra.mxu1 %vm254_vm1, %v427_v4 }
  0xb0   : > { %v270_v5 = vpop.f32.mrf.mxu0  ;;  %v275_v6 = vpop.f32.mrf.mxu1 }
  0xb1   : > { %288 = vadd.xlane.f32.xlu1 %v275_v6  ;;  %284 = vadd.xlane.f32.xlu0 %v270_v5  ;;  %v305_v7 = vmul.f32 %v270_v5, %v270_v5  ;;  %v307_v12 = vmul.f32 %v275_v6, %v275_v6 }
  0xb3   : > { %309 = vadd.xlane.f32.xlu2 %v305_v7 }
  0xb8   : > { %v272_v8 = vpop.f32.mrf.mxu0  ;;  %v277_v9 = vpop.f32.mrf.mxu1 }
  0xb9   : > { %v306_v10 = vmul.f32 %v272_v8, %v272_v8  ;;  %290 = vadd.xlane.f32.xlu1 %v277_v9  ;;  %286 = vadd.xlane.f32.xlu0 %v272_v8  ;;  %v308_v11 = vmul.f32 %v277_v9, %v277_v9 }
  0xbb   : > { %311 = vadd.xlane.f32.xlu2 %v306_v10 }
  0xc1   : > { %315 = vadd.xlane.f32.xlu1 %v308_v11  ;;  %313 = vadd.xlane.f32.xlu0 %v307_v12 }
 0x124   : > { %v289_v15 = vpop.xlane.xlu1 %288  ;;  %v285_v16 = vpop.xlane.xlu0 %284 }
 0x125   : > { %v294_v18 = vadd.f32 %v289_v15, %v282_v13  ;;  %v292_v19 = vadd.f32 %v285_v16, %v280_v14 }
 0x126   : > { %v310_v20 = vpop.xlane.xlu2 %309 }
 0x127   : > { %299 = vst.msk [vmem:[%s830_s2 + $0x10] sm:$0xff] %vm296_vm2, %v294_v18  ;;  %v317_v21 = vadd.f32 %v310_v20, %v301_v17 }
 0x128   : > { %297 = vst.msk [vmem:[%s830_s2] sm:$0xff] %vm296_vm2, %v292_v19 }
 0x129   : > { %321 = vst.msk [vmem:[%s831_s3] sm:$0xff] %vm296_vm2, %v317_v21 }
 0x12c   : > { %v291_v24 = vpop.xlane.xlu1 %290  ;;  %v287_v25 = vpop.xlane.xlu0 %286 }
 0x12d   : > { %v295_v27 = vadd.f32 %v291_v24, %v283_v22  ;;  %v293_v28 = vadd.f32 %v287_v25, %v281_v23 }
 0x12e   : > { %v312_v29 = vpop.xlane.xlu2 %311 }
 0x12f   : > { %300 = vst.msk [vmem:[%s830_s2 + $0x18] sm:$0xff] %vm296_vm2, %v295_v27  ;;  %v318_v30 = vadd.f32 %v312_v29, %v302_v26 }
 0x130   : > { %298 = vst.msk [vmem:[%s830_s2 + $0x8] sm:$0xff] %vm296_vm2, %v293_v28 }
 0x131   : > { %322 = vst.msk [vmem:[%s831_s3 + $0x8] sm:$0xff] %vm296_vm2, %v318_v30 }
 0x134   : > { %v316_v33 = vpop.xlane.xlu1 %315  ;;  %v314_v34 = vpop.xlane.xlu0 %313 }
 0x135   : > { %v320_v35 = vadd.f32 %v316_v33, %v304_v31  ;;  %v319_v36 = vadd.f32 %v314_v34, %v303_v32 }
 0x137   : > { %324 = vst.msk [vmem:[%s831_s3 + $0x18] sm:$0xff] %vm296_vm2, %v320_v35 }
 0x138   : > { %323 = vst.msk [vmem:[%s831_s3 + $0x10] sm:$0xff] %vm296_vm2, %v319_v36 }
 0x139 PF: > { %s18_s17 = sadd.s32 1, %s615_s17   ;;  %s836_s12 = smov %s599_s13 }
 0x13a   : > { %p15_p1 = scmp.ge.s32.totalorder %s18_s17, 4   ;;  %s837_s13 = smov %s603_s14 }
 0x13b   : > { %s838_s14 = smov %s711_s9  ;;  %s839_s15 = smov %s611_s16 }
 0x13c   : > { %s840_s16 = smov %s842_s29  ;;  %17 = sbr.rel (!%p15_p1) target bundleno = 5 (0x5), region = 81 }
 0x141   :  { %342 = vsyncpa [#allocation3], 1 }
 0x142   :  { %344 = vsyncpa [#allocation3 + $0x1], 1 }
 0x143   :  { %345 = vsyncpa [#allocation5], 1 }
 0x144   :  { %347 = vsyncpa [#allocation5 + $0x1], 1 }

</bundles_post_ra>
